<compile_context>
chip_gen: v7x
topology: tpu7x:2x2x1
jax: 0.10.0
libtpu: 0.0.40
codegen_flags: <defaults>
</compile_context>

<pallas_src>
import functools

import jax
import jax.numpy as jnp
from jax.experimental import pallas as pl
from jax.experimental.pallas import tpu as pltpu

EOS = 1e-10
LANE = 128


def _round_up(n, m):
    return ((n + m - 1) // m) * m


def _pad2(a, rows, cols):
    r, c = a.shape
    return jnp.pad(a, ((0, rows - r), (0, cols - c)))


def _pick_tile(n, candidates):
    for t in candidates:
        if t <= n and n % t == 0:
            return t
    return n


def _lapla_stage_kernel(d_dst_ref, h_dst_ref, w_ref, b_ref,
                        a_ref, h_src_ref, d_src_ref,
                        o_ref, acc_ref, *, apply_relu):
    """One (row-tile i, col-tile k) step of:
         acc += A_sl[i, k] @ (h[k] * d[k])        (bf16 MXU, f32 accumulate)
       and at the last k tile:
         lap  = h[i] - d[i] * acc                 (row tile of L @ h)
         out  = lap @ W + b  (+ ReLU)             (feature-dim linear)
    """
    k = pl.program_id(1)

    @pl.when(k == 0)
    def _():
        acc_ref[...] = jnp.zeros_like(acc_ref)

    # MXU work of the inner loop: bf16 x bf16 -> f32 accumulate.
    hd = (h_src_ref[...] * d_src_ref[...]).astype(jnp.bfloat16)
    acc_ref[...] += jnp.dot(a_ref[...], hd, preferred_element_type=jnp.float32)

    # Finalize once per row tile: biases / d_dst broadcasts stay out of the
    # per-k path.
    @pl.when(k == pl.num_programs(1) - 1)
    def _():
        lap = h_dst_ref[...] - d_dst_ref[...] * acc_ref[...]
        out = jnp.dot(lap, w_ref[...], preferred_element_type=jnp.float32) + b_ref[...]
        if apply_relu:
            out = jnp.maximum(out, 0.0)
        o_ref[...] = out.astype(o_ref.dtype)


def _lapla_stage(a_bf16, h, d, w, b, *, apply_relu, tm, tk, out_dtype):
    n_pad = a_bf16.shape[0]
    f_in = h.shape[1]
    f_out = w.shape[1]
    grid = (n_pad // tm, n_pad // tk)

    kernel = functools.partial(_lapla_stage_kernel, apply_relu=apply_relu)
    return pl.pallas_call(
        kernel,
        out_shape=jax.ShapeDtypeStruct((n_pad, f_out), out_dtype),
        grid_spec=pltpu.PrefetchScalarGridSpec(
            num_scalar_prefetch=0,
            grid=grid,
            in_specs=[
                pl.BlockSpec((tm, 1),       lambda i, k: (i, 0)),   # d   (dst rows)
                pl.BlockSpec((tm, f_in),    lambda i, k: (i, 0)),   # h   (dst rows)
                pl.BlockSpec((f_in, f_out), lambda i, k: (0, 0)),   # W
                pl.BlockSpec((1, f_out),    lambda i, k: (0, 0)),   # b
                pl.BlockSpec((tm, tk),      lambda i, k: (i, k)),   # A_sl tile (bf16)
                pl.BlockSpec((tk, f_in),    lambda i, k: (k, 0)),   # h   (src cols)
                pl.BlockSpec((tk, 1),       lambda i, k: (k, 0)),   # d   (src cols)
            ],
            out_specs=pl.BlockSpec((tm, f_out), lambda i, k: (i, 0)),
            scratch_shapes=[pltpu.VMEM((tm, f_in), jnp.float32)],
        ),
        compiler_params=pltpu.CompilerParams(
            dimension_semantics=("parallel", "arbitrary"),
        ),
    )(d, h, w, b, a_bf16, h, d)


def high_filter(x, adj, w1, b1, w2, b2, *, tm=256, tk=512):
    """Forward of High_filter.  adj is the dense adjacency A[u, v] = 1 for
    every edge u -> v (no self-loops required; they are added here, like the
    module's `adj += eye`).  Linear weights are passed already transposed to
    [in, out]; biases as [1, out]."""
    N, in_dim = x.shape
    hid_dim = w1.shape[1]
    out_dim = w2.shape[1]

    # --- hoisted scalar/row work (cheap O(N^2) reduce, done once in XLA) ---
    a_sl = adj.astype(jnp.float32) + jnp.eye(N, dtype=jnp.float32)
    deg = jnp.sum(a_sl, axis=1, keepdims=True)
    d = 1.0 / (jnp.sqrt(deg) + EOS)                       # [N, 1] f32

    # --- pad node & feature dims to lane-friendly multiples of 128 ---
    n_pad = _round_up(N, LANE)
    in_p = _round_up(in_dim, LANE)
    hid_p = _round_up(hid_dim, LANE)
    out_p = _round_up(out_dim, LANE)

    a_p = _pad2(a_sl, n_pad, n_pad).astype(jnp.bfloat16)  # 0/1/2 are exact in bf16
    x_p = _pad2(x.astype(jnp.float32), n_pad, in_p)
    d_p = _pad2(d, n_pad, 1)                              # padded nodes get d = 0
    w1_p = _pad2(w1.astype(jnp.float32), in_p, hid_p)
    b1_p = _pad2(b1.astype(jnp.float32), 1, hid_p)
    w2_p = _pad2(w2.astype(jnp.float32), hid_p, out_p)
    b2_p = _pad2(b2.astype(jnp.float32), 1, out_p)

    # Tile sizes: sized for the smallest VMEM generation (v7x 64 MiB total);
    # clipped so they divide the padded node count.
    tm = _pick_tile(n_pad, (tm, 256, 128))
    tk = _pick_tile(n_pad, (tk, 512, 256, 128))

    # Stage 1: h1 = relu((L @ x) @ W1 + b1)
    h1 = _lapla_stage(a_p, x_p, d_p, w1_p, b1_p,
                      apply_relu=True, tm=tm, tk=tk, out_dtype=jnp.float32)
    # Stage 2: out = (L @ h1) @ W2 + b2
    out = _lapla_stage(a_p, h1, d_p, w2_p, b2_p,
                       apply_relu=False, tm=tm, tk=tk, out_dtype=x.dtype)

    return out[:N, :out_dim]


def reference(x, adj, w1, b1, w2, b2):
    """Pure-JAX f32 reference mirroring the PyTorch module."""
    n = x.shape[0]
    a_sl = adj.astype(jnp.float32) + jnp.eye(n, dtype=jnp.float32)
    deg = jnp.sum(a_sl, axis=1, keepdims=True)
    d = 1.0 / (jnp.sqrt(deg) + EOS)
    na = d * a_sl * d.T
    lap = jnp.eye(n, dtype=jnp.float32) - na
    x1 = lap @ x
    h1 = jnp.maximum(x1 @ w1 + b1, 0.0)
    h2 = lap @ h1
    return h2 @ w2 + b2


if __name__ == "__main__":
    # Small deterministic example (200 nodes pads to 256 -> a 2x2 tile grid
    # with tm=tk=128, exercising both the accumulate and finalize paths).
    N, in_dim, hid_dim, out_dim = 200, 16, 32, 8

    key = jax.random.PRNGKey(0)
    k_x, k_a, k_w1, k_b1, k_w2, k_b2 = jax.random.split(key, 6)

    x = jax.random.normal(k_x, (N, in_dim), dtype=jnp.float32)
    # Random directed graph as dense adjacency A[u, v] = 1 for edge u -> v.
    adj = (jax.random.uniform(k_a, (N, N)) < 0.05).astype(jnp.float32)

    # Parameters (PyTorch Linear weight [out, in] is stored transposed here).
    w1 = jax.random.normal(k_w1, (in_dim, hid_dim), dtype=jnp.float32) * 0.1
    b1 = jax.random.normal(k_b1, (1, hid_dim), dtype=jnp.float32) * 0.1
    w2 = jax.random.normal(k_w2, (hid_dim, out_dim), dtype=jnp.float32) * 0.1
    b2 = jax.random.normal(k_b2, (1, out_dim), dtype=jnp.float32) * 0.1

    out = high_filter(x, adj, w1, b1, w2, b2, tm=128, tk=128)
    out = jax.block_until_ready(out)

    ref = reference(x, adj, w1, b1, w2, b2)
    assert out.shape == (N, out_dim)
    max_err = float(jnp.max(jnp.abs(out - ref)))
    # bf16 MXU inputs (adjacency + scaled features) with f32 accumulation:
    # expected abs error ~1e-3 at these magnitudes.
    assert jnp.allclose(out, ref, atol=2e-2, rtol=2e-2), (
        f"mismatch vs reference (max abs err {max_err})")

    print("KERNEL_OK")
</pallas_src>

<mosaic_0001>
module attributes {stable_mosaic.version = 11 : i64} {
  func.func @_lapla_stage_kernel(%arg0: i32, %arg1: i32, %arg2: memref<128x1xf32, #tpu.memory_space<vmem>>, %arg3: memref<128x128xf32, #tpu.memory_space<vmem>>, %arg4: memref<128x128xf32, #tpu.memory_space<vmem>>, %arg5: memref<1x128xf32, #tpu.memory_space<vmem>>, %arg6: memref<128x128xbf16, #tpu.memory_space<vmem>>, %arg7: memref<128x128xf32, #tpu.memory_space<vmem>>, %arg8: memref<128x1xf32, #tpu.memory_space<vmem>>, %arg9: memref<128x128xf32, #tpu.memory_space<vmem>>, %arg10: memref<128x128xf32, #tpu.memory_space<vmem>>) attributes {dimension_semantics = [#tpu.dimension_semantics<parallel>, #tpu.dimension_semantics<arbitrary>], iteration_bounds = array<i64: 2, 2>, scalar_prefetch = 0 : i64, scratch_operands = 1 : i64, tpu.core_type = #tpu.core_type<tc>, window_params = [{transform_indices = @transform_0, window_bounds = array<i64: 128, 1>}, {transform_indices = @transform_1, window_bounds = array<i64: 128, 128>}, {pipeline_mode = #tpu.pipeline_mode<synchronous>, transform_indices = @transform_2, window_bounds = array<i64: 128, 128>}, {pipeline_mode = #tpu.pipeline_mode<synchronous>, transform_indices = @transform_3, window_bounds = array<i64: 1, 128>}, {transform_indices = @transform_4, window_bounds = array<i64: 128, 128>}, {transform_indices = @transform_5, window_bounds = array<i64: 128, 128>}, {transform_indices = @transform_6, window_bounds = array<i64: 128, 1>}, {transform_indices = @transform_7, window_bounds = array<i64: 128, 128>}]} {
    %c0_i32 = arith.constant 0 : i32
    %0 = arith.cmpi eq, %arg1, %c0_i32 : i32
    %1 = arith.extui %0 : i1 to i32
    %c0_i32_0 = arith.constant 0 : i32
    %2 = arith.cmpi ne, %1, %c0_i32_0 : i32
    scf.if %2 {
      %cst_11 = arith.constant 0.000000e+00 : f32
      %16 = vector.broadcast %cst_11 : f32 to vector<128x128xf32>
      %c0_12 = arith.constant 0 : index
      %c0_13 = arith.constant 0 : index
      %17 = vector.load %arg10[%c0_12, %c0_13] : memref<128x128xf32, #tpu.memory_space<vmem>>, vector<128x128xf32>
      tpu.vector_store %arg10[%c0_12, %c0_13], %16 {strides = array<i32>} : memref<128x128xf32, #tpu.memory_space<vmem>>, vector<128x128xf32>,
    } else {
    }
    %c0 = arith.constant 0 : index
    %c0_1 = arith.constant 0 : index
    %3 = vector.load %arg7[%c0, %c0_1] : memref<128x128xf32, #tpu.memory_space<vmem>>, vector<128x128xf32>
    %c0_2 = arith.constant 0 : index
    %c0_3 = arith.constant 0 : index
    %4 = vector.load %arg8[%c0_2, %c0_3] : memref<128x1xf32, #tpu.memory_space<vmem>>, vector<128x1xf32>
    %5 = vector.broadcast %4 : vector<128x1xf32> to vector<128x128xf32>
    %6 = arith.mulf %3, %5 : vector<128x128xf32>
    %7 = arith.truncf %6 : vector<128x128xf32> to vector<128x128xbf16>
    %c0_4 = arith.constant 0 : index
    %c0_5 = arith.constant 0 : index
    %8 = vector.load %arg10[%c0_4, %c0_5] : memref<128x128xf32, #tpu.memory_space<vmem>>, vector<128x128xf32>
    %c0_6 = arith.constant 0 : index
    %c0_7 = arith.constant 0 : index
    %9 = vector.load %arg6[%c0_6, %c0_7] : memref<128x128xbf16, #tpu.memory_space<vmem>>, vector<128x128xbf16>
    %cst = arith.constant dense<0.000000e+00> : vector<128x128xf32>
    %10 = tpu.matmul %9, %7, %cst {dimension_numbers = #tpu.dot_dimension_numbers<[1], [0], [0], [1], [0, 0, 1, 1], [], []>} : vector<128x128xbf16>, vector<128x128xbf16>, vector<128x128xf32> -> vector<128x128xf32>
    %11 = arith.addf %8, %10 : vector<128x128xf32>
    %c0_8 = arith.constant 0 : index
    %c0_9 = arith.constant 0 : index
    %12 = vector.load %arg10[%c0_8, %c0_9] : memref<128x128xf32, #tpu.memory_space<vmem>>, vector<128x128xf32>
    tpu.vector_store %arg10[%c0_8, %c0_9], %11 {strides = array<i32>} : memref<128x128xf32, #tpu.memory_space<vmem>>, vector<128x128xf32>,
    %c1_i32 = arith.constant 1 : i32
    %13 = arith.cmpi eq, %arg1, %c1_i32 : i32
    %14 = arith.extui %13 : i1 to i32
    %c0_i32_10 = arith.constant 0 : i32
    %15 = arith.cmpi ne, %14, %c0_i32_10 : i32
    scf.if %15 {
      %c0_11 = arith.constant 0 : index
      %c0_12 = arith.constant 0 : index
      %16 = vector.load %arg3[%c0_11, %c0_12] : memref<128x128xf32, #tpu.memory_space<vmem>>, vector<128x128xf32>
      %c0_13 = arith.constant 0 : index
      %c0_14 = arith.constant 0 : index
      %17 = vector.load %arg2[%c0_13, %c0_14] : memref<128x1xf32, #tpu.memory_space<vmem>>, vector<128x1xf32>
      %c0_15 = arith.constant 0 : index
      %c0_16 = arith.constant 0 : index
      %18 = vector.load %arg10[%c0_15, %c0_16] : memref<128x128xf32, #tpu.memory_space<vmem>>, vector<128x128xf32>
      %19 = vector.broadcast %17 : vector<128x1xf32> to vector<128x128xf32>
      %20 = arith.mulf %19, %18 : vector<128x128xf32>
      %21 = arith.subf %16, %20 : vector<128x128xf32>
      %c0_17 = arith.constant 0 : index
      %c0_18 = arith.constant 0 : index
      %22 = vector.load %arg4[%c0_17, %c0_18] : memref<128x128xf32, #tpu.memory_space<vmem>>, vector<128x128xf32>
      %cst_19 = arith.constant dense<0.000000e+00> : vector<128x128xf32>
      %23 = tpu.matmul %21, %22, %cst_19 {dimension_numbers = #tpu.dot_dimension_numbers<[1], [0], [0], [1], [0, 0, 1, 1], [], []>} : vector<128x128xf32>, vector<128x128xf32>, vector<128x128xf32> -> vector<128x128xf32>
      %c0_20 = arith.constant 0 : index
      %c0_21 = arith.constant 0 : index
      %24 = vector.load %arg5[%c0_20, %c0_21] : memref<1x128xf32, #tpu.memory_space<vmem>>, vector<1x128xf32>
      %25 = vector.broadcast %24 : vector<1x128xf32> to vector<128x128xf32>
      %26 = arith.addf %23, %25 : vector<128x128xf32>
      %cst_22 = arith.constant 0.000000e+00 : f32
      %27 = vector.broadcast %cst_22 : f32 to vector<128x128xf32>
      %28 = arith.maximumf %26, %27 : vector<128x128xf32>
      %c0_23 = arith.constant 0 : index
      %c0_24 = arith.constant 0 : index
      %29 = vector.load %arg9[%c0_23, %c0_24] : memref<128x128xf32, #tpu.memory_space<vmem>>, vector<128x128xf32>
      tpu.vector_store %arg9[%c0_23, %c0_24], %28 {strides = array<i32>} : memref<128x128xf32, #tpu.memory_space<vmem>>, vector<128x128xf32>,
    } else {
    }
    return
  }
  func.func @transform_0(%arg0: i32, %arg1: i32) -> (i32, i32) {
    %c0_i32 = arith.constant 0 : i32
    %c0_i32_0 = arith.constant 0 : i32
    return %arg0, %c0_i32 : i32, i32
  }
  func.func @transform_1(%arg0: i32, %arg1: i32) -> (i32, i32) {
    %c0_i32 = arith.constant 0 : i32
    %c0_i32_0 = arith.constant 0 : i32
    return %arg0, %c0_i32 : i32, i32
  }
  func.func @transform_2(%arg0: i32, %arg1: i32) -> (i32, i32) {
    %c0_i32 = arith.constant 0 : i32
    %c0_i32_0 = arith.constant 0 : i32
    %c0_i32_1 = arith.constant 0 : i32
    return %c0_i32, %c0_i32_0 : i32, i32
  }
  func.func @transform_3(%arg0: i32, %arg1: i32) -> (i32, i32) {
    %c0_i32 = arith.constant 0 : i32
    %c0_i32_0 = arith.constant 0 : i32
    %c0_i32_1 = arith.constant 0 : i32
    return %c0_i32, %c0_i32_0 : i32, i32
  }
  func.func @transform_4(%arg0: i32, %arg1: i32) -> (i32, i32) {
    %c0_i32 = arith.constant 0 : i32
    return %arg0, %arg1 : i32, i32
  }
  func.func @transform_5(%arg0: i32, %arg1: i32) -> (i32, i32) {
    %c0_i32 = arith.constant 0 : i32
    %c0_i32_0 = arith.constant 0 : i32
    return %arg1, %c0_i32 : i32, i32
  }
  func.func @transform_6(%arg0: i32, %arg1: i32) -> (i32, i32) {
    %c0_i32 = arith.constant 0 : i32
    %c0_i32_0 = arith.constant 0 : i32
    return %arg1, %c0_i32 : i32, i32
  }
  func.func @transform_7(%arg0: i32, %arg1: i32) -> (i32, i32) {
    %c0_i32 = arith.constant 0 : i32
    %c0_i32_0 = arith.constant 0 : i32
    return %arg0, %c0_i32 : i32, i32
  }
}

</mosaic_0001>

<bundles_post_ra>
// kernel: tpu_custom_call.1
= control target key start
LH: loop header
LB: loop body
LE: loop exit
PB: predicated region body
PF: predicated region fallthrough
CT: control target
= control target key end

     0   :  { %s2492_s0 = inlined_call_operand.vmem [shape: f32[256,1], index: 0, kind: input, shape index: {}]   ;;  %s2493_s1 = inlined_call_operand.vmem [shape: f32[256,128], index: 1, kind: input, shape index: {}]   ;;  %s2494_s2 = inlined_call_operand.hbm [shape: f32[128,128], index: 2, kind: input, shape index: {}]   ;;  %s2495_s3 = inlined_call_operand.vmem [shape: f32[1,128], index: 3, kind: input, shape index: {}]   ;;  %s2496_s4 = inlined_call_operand.vmem [shape: bf16[256,256], index: 4, kind: input, shape index: {}]   ;;  %s2497_s5 = inlined_call_operand.hbm [shape: f32[256,128], index: 5, kind: input, shape index: {}]   ;;  %s2498_s6 = inlined_call_operand.vmem [shape: f32[256,1], index: 6, kind: input, shape index: {}]   ;;  %s2499_s7 = inlined_call_operand.hbm [shape: f32[256,128], index: 7, kind: output, shape index: {}]  }
   0x1   :  { %2515 = sst [smem:[#allocation22_spill]] %s2492_s0 }
   0x2   :  { %2516 = sst [smem:[#allocation23_spill]] %s2493_s1 }
   0x3   :  { %2517 = sst [smem:[#allocation24_spill]] %s2494_s2 }
   0x4   :  { %2518 = sst [smem:[#allocation25_spill]] %s2495_s3 }
   0x5   :  { %2519 = sst [smem:[#allocation26_spill]] %s2498_s6 }
   0x6   :  { %2520 = sst [smem:[#allocation27_spill]] %s2499_s7 }
   0x7   :  { %12 = vsyncpa [#allocation4], 0 }
   0x8   :  { %13 = vsyncpa [#allocation8], 0 }
   0x9   :  { %15 = vsyncpa [#allocation8 + $0x1], 0 }
   0xa   :  { %16 = vsyncpa [#allocation5], 0 }
   0xb   :  { %18 = vsyncpa [#allocation5 + $0x1], 0  ;;  %s2054_s24 = smov 0   ;;  %s2056_s25 = smov 0  }
   0xc   :  { %s2058_s26 = smov 0   ;;  %s2060_s27 = smov 0  }
   0xd   :  { %s2062_s28 = smov 0   ;;  %s2064_s29 = smov 0  }
   0xe   :  { %s2066_s30 = smov 0   ;;  %s2068_s8 = smov 0  }
   0xf   :  { %s2070_s9 = smov 0   ;;  %s2072_s10 = smov 0  }
  0x10   :  { %s2074_s11 = smov 0   ;;  %s2076_s12 = smov 0  }
  0x11   :  { %s2078_s13 = smov 0  }
  0x12 LB: > { %2521 = sst [smem:[#allocation13_spill]] %s1952_s24  ;;  %s33_s16 = sadd.s32 1, %s1992_s11  ;;  %s2000_s13 = sphi %s2078_s13, %s24_s13   ;;  %s1996_s12 = sphi %s2076_s12, %s2577_s12   ;;  %s1992_s11 = sphi %s2074_s11, %s2576_s11   ;;  %s1988_s10 = sphi %s2072_s10, %s2575_s10   ;;  %s1984_s9 = sphi %s2070_s9, %s2574_s9   ;;  %s1980_s8 = sphi %s2068_s8, %s2573_s8   ;;  %s1976_s30 = sphi %s2066_s30, %s2572_s30   ;;  %s1972_s29 = sphi %s2064_s29, %s2571_s29   ;;  %s1968_s28 = sphi %s2062_s28, %s2570_s28   ;;  %s1964_s27 = sphi %s2060_s27, %s2569_s27   ;;  %s1960_s26 = sphi %s2058_s26, %s2568_s26   ;;  %s1956_s25 = sphi %s2056_s25, %s2567_s25   ;;  %s1952_s24 = sphi %s2054_s24, %s2566_s24  }
  0x13   : > { %2522 = sst [smem:[#allocation14_spill]] %s1960_s26  ;;  %s36_s17 = sadd.s32 1, %s1996_s12 }
  0x14   : > { %p34_p0 = scmp.ge.s32.totalorder %s33_s16, 2  ;;  %s139_s18 = sadd.s32 1, %s1980_s8 }
  0x15   : > { %p146_p1 = scmp.ne.s32.totalorder %s1980_s8, %s1976_s30  ;;  %p147_p2 = scmp.eq.s32.totalorder %s2000_s13, 0 }
  0x16   : > { %s2579_s16 = smov (%p34_p0, %s33_s16), 0  ;;  %s2581_s17 = smov (!%p34_p0, %s36_s17), %s1996_s12 }
  0x17   : > { %2523 = sst [smem:[#allocation15_spill]] %s2579_s16  ;;  %s135_s19 = ssub.s32 %s1992_s11, %s2579_s16 }
  0x18   : > { %p2132_p3 = por %p147_p2, %p146_p1  ;;  %p38_p4 = scmp.ge.s32.totalorder %s2581_s17, 2 }
  0x19   : > { %p163_p5 = scmp.eq.s32.totalorder %s135_s19, 0  ;;  %s165_s21 = sadd.s32 1, %s1972_s29 }
  0x1a   : > { %s2524_s20 = scalar_select %p2132_p3, 1, 0 }
  0x1b   : > { %p172_p6 = scmp.ne.s32.totalorder %s1972_s29, %s1968_s28  ;;  %s2583_s17 = smov (%p38_p4, %s2581_s17), 0 }
  0x1c   : > { %2525 = sst [smem:[#allocation16_spill]] %s2583_s17  ;;  %s134_s23 = ssub.s32 %s1996_s12, %s2583_s17 }
  0x1d   : > { %s2142_s22 = scalar_select %p163_p5, %s1972_s29, %s165_s21  }
  0x1e   : > { %p2146_p7 = por %p172_p6, %p147_p2  ;;  %s136_s14 = sor.u32 %s135_s19, %s134_s23 }
  0x1f   : > { %2526 = sst [smem:[#allocation17_spill]] %s2142_s22  ;;  %p178_p8 = scmp.ne.s32.totalorder %s1968_s28, %s1964_s27 }
  0x20   : > { %s2527_s15 = scalar_select %p2146_p7, 1, 0 }
  0x21   : > { %p137_p9 = scmp.eq.s32.totalorder %s136_s14, 0  ;;  %s2528_s16 = sadd.s32 4294967295, %s2000_s13  }
  0x22   : > { %p2154_p10 = scmp.eq.s32.totalorder %s2528_s16, 0  ;;  %p215_p11 = scmp.eq.s32.totalorder %s134_s23, 0 }
  0x23   : > { %s217_s3 = sadd.s32 1, %s1960_s26  ;;  %p227_p13 = scmp.ne.s32.totalorder %s1960_s26, %s1956_s25 }
  0x24   : > { %s2529_s7 = scalar_select %p2154_p10, 1, 0 }
  0x25   : > { %s2160_s21 = scalar_select %p137_p9, %s1980_s8, %s139_s18  }
  0x26   : > { %p2164_p12 = por %p2154_p10, %p178_p8  ;;  %s2533_s27 = smov %s2528_s16 }
  0x27   : > { %2530 = sst [smem:[#allocation18_spill]] %s2160_s21  ;;  %p228_p0 = scmp.eq.s32.totalorder %s2533_s27, 3 }
  0x28   : > { %s2531_s17 = scalar_select %p2164_p12, 1, 0 }
  0x29   : > { %s2171_s19 = scalar_select %p215_p11, %s1960_s26, %s217_s3  }
  0x2a   : > { %p233_p1 = scmp.ne.s32.totalorder %s1956_s25, %s1952_s24  ;;  %s2534_s14 = sadd.s32 4294967294, %s2000_s13  }
  0x2b   : > { %2532 = sst [smem:[#allocation19_spill]] %s2171_s19  ;;  %p234_p2 = scmp.eq.s32.totalorder %s2534_s14, 3 }
  0x2c   : > { %p1417_p4 = scmp.ge.s32.totalorder %s2000_s13, 1  ;;  %p2180_p5 = por %p228_p0, %p227_p13 }
  0x2d   : > { %p241_p6 = scmp.lt.s32.totalorder %s2000_s13, 5  ;;  %p2185_p9 = por %p234_p2, %p233_p1 }
  0x2e   : > { %s2535_s16 = scalar_select %p2180_p5, 1, 0 }
  0x2f   : > { %s2537_s18 = scalar_select %p2185_p9, 1, 0 }
  0x30   : > { %2536 = sst [smem:[#allocation20_spill]] %s2535_s16  ;;  %p2189_p8 = pnand %p1417_p4, %p241_p6 }
  0x31   : > { %2538 = sst [smem:[#allocation21_spill]] %s2537_s18  ;;  %s2002_s3 = smov [#allocation3]  }
  0x32   : > { %s2539_s23 = scalar_select %p2189_p8, 1, 0 }
  0x33   : > { %s253_s27 = sshll.u32 %s2002_s3, 4  ;;  %p1665_p11 = pneg %p2189_p8  ;;  %s254_s27 = int_to_ptr.vmem [resolvable:$true] %s253_s27 }
  0x34   : > { %s2541_s2 = sld [smem:[#allocation24_spill]] }
  0x35   : > { %p2197_p13 = pnand %p1665_p11, %p2154_p10 }
  0x37   : > { %p1804_p1 = pneg %p2197_p13 }
  0x3a   : > { %s1802_s19 = scalar_lea.hbm %s2541_s2, 2048 }
  0x3b   : > { %p1803_p0 = scmp.ne.s32.totalorder %s2541_s2, %s1802_s19  ;;  %p1809_p6 = scmp.lt.u32.totalorder %s1802_s19, %s2541_s2 }
  0x3d   : > { %p1805_p2 = pnand %p1804_p1, %p1803_p0 }
  0x3f   : > { %p1806_p4 = pneg %p1805_p2 }
  0x41   : > { %p1811_p11 = pnand %p1809_p6, %p1806_p4 }
  0x43   : > { %1814 = shalt.err (!%p1811_p11)
}
  0x44   : > { %s1815_s16 = scalar_lea.vmem %s254_s27, 2048  ;;  %p1823_p10 = scmp.lt.s32.totalorder %s254_s27, %s254_s27 }
  0x45   : > { %p1816_p9 = scmp.ne.s32.totalorder %s254_s27, %s1815_s16  ;;  %p1824_p8 = scmp.lt.s32.totalorder %s1815_s16, %s1815_s16 }
  0x47   : > { %p1818_p5 = pnand %p1816_p9, %p1804_p1  ;;  %p1825_p7 = por %p1824_p8, %p1823_p10 }
  0x49   : > { %p1819_p12 = pneg %p1818_p5 }
  0x4b   : > { %p1826_p3 = pnand %p1825_p7, %p1819_p12 }
  0x4d   : > { %1829 = shalt.err (!%p1826_p3)
}
  0x4e   : > { %s2003_s26 = smov 128   ;;  %s2004_s22 = smov 8  }
  0x4f   : > { %1668 = dma.hbm_to_vmem [thread:$0]  (!%p2197_p13), %s2541_s2, 2048, %s254_s27, [#allocation4], %s2003_s26, %s2003_s26, %s2004_s22  }
  0x50   : > { %p1419_p0 = scmp.ge.s32.totalorder %s2000_s13, 4 }
  0x51   : > { %p2542_p2 = scmp.ne.s32.totalorder (!%p1419_p0), %s2524_s20, 0 }
  0x52   : > { %266 = sbr.rel (%p1419_p0) target bundleno = 132 (0x84), region = 24 }
  0x59   : > { %287 = sbr.rel (!%p2542_p2) target bundleno = 105 (0x69), region = 36  ;;  %s289_s24 = sand.u32 (%p2542_p2), 1, %s1980_s8  }
  0x5a   : > { %s1454_s19 = sshll.u32 (%p2542_p2), %s1996_s12, 5  ;;  %s1420_s16 = sshll.u32 (%p2542_p2), %s289_s24, 6 }
  0x5b   : > { %s294_s3 = sadd.s32 (%p2542_p2), %s1992_s11, %s1454_s19  ;;  %s291_s20 = scalar_lea.vmem (%p2542_p2), [#allocation6], %s1420_s16 }
  0x5c   : > { %s1423_s6 = sshll.u32 (%p2542_p2), %s294_s3, 2 }
  0x5d   : > { %s2226_s0 = scalar_lea.vmem (%p2542_p2), %s2496_s4, %s1423_s6 }
  0x5e   : > { %v312_v0 = vld [vmem:[%s2226_s0] sm:$0xf] (%p2542_p2)  ;;  %v314_v1 = vld [vmem:[%s2226_s0 + $0x8] sm:$0xf] (%p2542_p2)  ;;  %v316_v2 = vld [vmem:[%s2226_s0 + $0x10] sm:$0xf] (%p2542_p2) }
  0x5f   : > { %313 = vst [vmem:[%s291_s20] sm:$0xf] (%p2542_p2), %v312_v0  ;;  %315 = vst [vmem:[%s291_s20 + $0x4] sm:$0xf] (%p2542_p2), %v314_v1  ;;  %v318_v3 = vld [vmem:[%s2226_s0 + $0x18] sm:$0xf] (%p2542_p2) }
  0x60   : > { %317 = vst [vmem:[%s291_s20 + $0x8] sm:$0xf] %v316_v2  ;;  %v320_v4 = vld [vmem:[%s2226_s0 + $0x20] sm:$0xf]  ;;  %v322_v5 = vld [vmem:[%s2226_s0 + $0x28] sm:$0xf] }
  0x61   : > { %319 = vst [vmem:[%s291_s20 + $0xc] sm:$0xf] %v318_v3  ;;  %321 = vst [vmem:[%s291_s20 + $0x10] sm:$0xf] %v320_v4  ;;  %v324_v6 = vld [vmem:[%s2226_s0 + $0x30] sm:$0xf] }
  0x62   : > { %323 = vst [vmem:[%s291_s20 + $0x14] sm:$0xf] %v322_v5  ;;  %v326_v7 = vld [vmem:[%s2226_s0 + $0x38] sm:$0xf]  ;;  %v328_v8 = vld [vmem:[%s2226_s0 + $0x40] sm:$0xf] }
  0x63   : > { %325 = vst [vmem:[%s291_s20 + $0x18] sm:$0xf] %v324_v6  ;;  %327 = vst [vmem:[%s291_s20 + $0x1c] sm:$0xf] %v326_v7  ;;  %v330_v9 = vld [vmem:[%s2226_s0 + $0x48] sm:$0xf] }
  0x64   : > { %329 = vst [vmem:[%s291_s20 + $0x20] sm:$0xf] %v328_v8  ;;  %v332_v10 = vld [vmem:[%s2226_s0 + $0x50] sm:$0xf]  ;;  %v334_v11 = vld [vmem:[%s2226_s0 + $0x58] sm:$0xf] }
  0x65   : > { %331 = vst [vmem:[%s291_s20 + $0x24] sm:$0xf] %v330_v9  ;;  %333 = vst [vmem:[%s291_s20 + $0x28] sm:$0xf] %v332_v10  ;;  %v336_v12 = vld [vmem:[%s2226_s0 + $0x60] sm:$0xf] }
  0x66   : > { %335 = vst [vmem:[%s291_s20 + $0x2c] sm:$0xf] %v334_v11  ;;  %v338_v13 = vld [vmem:[%s2226_s0 + $0x68] sm:$0xf]  ;;  %v340_v14 = vld [vmem:[%s2226_s0 + $0x70] sm:$0xf] }
  0x67   : > { %337 = vst [vmem:[%s291_s20 + $0x30] sm:$0xf] %v336_v12  ;;  %339 = vst [vmem:[%s291_s20 + $0x34] sm:$0xf] %v338_v13  ;;  %v342_v15 = vld [vmem:[%s2226_s0 + $0x78] sm:$0xf] }
  0x68   : > { %341 = vst [vmem:[%s291_s20 + $0x38] sm:$0xf] %v340_v14  ;;  %343 = vst [vmem:[%s291_s20 + $0x3c] sm:$0xf] %v342_v15 }
  0x69 PF: > { %s399_s1 = sand.u32 1, %s1972_s29   ;;  %s1455_s6 = sshll.u32 %s1992_s11, 11 }
  0x6a   : > { %s1424_s27 = sshll.u32 %s399_s1, 7  ;;  %s2249_s21 = scalar_lea.hbm %s2497_s5, %s1455_s6 }
  0x6b   : > { %s403_s18 = scalar_lea.vmem [#allocation7], %s1424_s27  ;;  %s2253_s0 = scalar_lea.sflag [#allocation8], %s399_s1 }
  0x6c   : > { %s410_s24 = sshll.u32 %s403_s18, 4  ;;  %s1830_s19 = scalar_lea.hbm %s2249_s21, 2048  ;;  %s2251_s24 = int_to_ptr.vmem [resolvable:$true] %s410_s24 }
  0x6d   : > { %p1831_p3 = scmp.ne.s32.totalorder %s2249_s21, %s1830_s19  ;;  %p2543_p7 = scmp.ne.s32.totalorder %s2527_s15, 0 }
  0x6e   : > { %s1834_s14 = scalar_lea.hbm %s2497_s5, 4096  ;;  %p1835_p5 = scmp.lt.u32.totalorder %s2249_s21, %s2497_s5 }
  0x6f   : > { %p1832_p10 = pnand %p1831_p3, %p2543_p7  ;;  %p1836_p9 = scmp.lt.u32.totalorder %s1834_s14, %s1830_s19 }
  0x70   : > { %p1838_p13 = scmp.lt.u32.totalorder %s1830_s19, %s2249_s21 }
  0x71   : > { %p1833_p12 = pneg %p1832_p10  ;;  %p1837_p8 = por %p1836_p9, %p1835_p5 }
  0x73   : > { %p1839_p1 = por %p1838_p13, %p1837_p8 }
  0x75   : > { %p1840_p4 = pnand %p1839_p1, %p1833_p12 }
  0x77   : > { %1843 = shalt.err (!%p1840_p4)
}
  0x78   : > { %s1844_s1 = scalar_lea.vmem %s2251_s24, 2048  ;;  %s2005_s27 = smov [#allocation7]  }
  0x79   : > { %p1845_p6 = scmp.ne.s32.totalorder %s2251_s24, %s1844_s1  ;;  %s1848_s26 = sshll.u32 %s2005_s27, 4  ;;  %s1849_s26 = int_to_ptr.vmem [resolvable:$false] %s1848_s26 }
  0x7a   : > { %s1850_s22 = scalar_lea.vmem %s1849_s26, 4096  ;;  %p1851_p2 = scmp.lt.s32.totalorder %s2251_s24, %s1849_s26 }
  0x7b   : > { %p1846_p11 = pnand %p1845_p6, %p2543_p7  ;;  %p1852_p3 = scmp.lt.s32.totalorder %s1850_s22, %s1844_s1 }
  0x7d   : > { %p1847_p0 = pneg %p1846_p11  ;;  %p1853_p10 = por %p1852_p3, %p1851_p2 }
  0x7f   : > { %p1854_p5 = pnand %p1853_p10, %p1847_p0 }
  0x81   : > { %1857 = shalt.err (!%p1854_p5)
}
  0x82   : > { %s2006_s18 = smov 128   ;;  %s2007_s19 = smov 8  }
  0x83   : > { %1659 = dma.hbm_to_vmem [thread:$0]  (%p2543_p7), %s2249_s21, 2048, %s2251_s24, %s2253_s0, %s2006_s18, %s2006_s18, %s2007_s19  }
  0x84 PF: > { %p2544_p12 = scmp.ne.s32.totalorder %s2539_s23, 0 }
  0x85   : > { %p2545_p9 = scmp.ne.s32.totalorder (!%p2544_p12), %s2529_s7, 0 }
  0x86   : > { %431 = sbr.rel (%p2544_p12) target bundleno = 942 (0x3ae), region = 85 }
  0x8d   : > { %1939 = dma.done.wait (%p2545_p9), [#allocation4], 2048  }
  0x8e   : > { %1941 = vsyncadd (%p2545_p9), [#allocation4], 4294965248  ;;  %s438_s16 = sand.u32 1, %s1976_s30   ;;  %s444_s3 = sand.u32 1, %s1968_s28  }
  0x8f   : > { %s1429_s14 = sshll.u32 %s438_s16, 6  ;;  %s1430_s20 = sshll.u32 %s444_s3, 7 }
  0x90   : > { %s2285_s6 = scalar_lea.vmem [#allocation6], %s1429_s14  ;;  %s445_s15 = scalar_lea.sflag [#allocation8], %s444_s3 }
  0x91   : > { %s2287_s21 = scalar_lea.vmem [#allocation7], %s1430_s20  ;;  %p2546_p7 = scmp.ne.s32.totalorder %s2531_s17, 0 }
  0x93   : > { %1943 = dma.done.wait (%p2546_p7), %s445_s15, 2048  }
  0x94   : > { %1945 = vsyncadd (%p2546_p7), %s445_s15, 4294965248  ;;  %s2514_s7 = sand.u32 1, %s1956_s25   ;;  %s1432_s23 = sshll.u32 %s1988_s10, 4 }
  0x95   : > { %s1431_s30 = sshll.u32 %s2514_s7, 7  ;;  %p499_p8 = scmp.lt.s32.totalorder %s1432_s23, 31 }
  0x96   : > { %s1436_s24 = sshll.u32 %s1984_s9, 4  ;;  %s2547_s26 = sld [smem:[#allocation22_spill]] }
  0x97   : > { %s2585_s23 = smov (!%p499_p8, %s1432_s23), 31  ;;  %p513_p13 = scmp.lt.s32.totalorder %s1436_s24, 31 }
  0x98   : > { %s1433_s0 = sshll.u32 %s2585_s23, 3  ;;  %s2548_s19 = sld [smem:[#allocation23_spill]] }
  0x99   : > { %s2587_s24 = smov (!%p513_p13, %s1436_s24), 31  ;;  %s2549_s15 = sld [smem:[#allocation26_spill]] }
  0x9a   : > { %s1437_s3 = sshll.u32 %s2587_s24, 3  ;;  %s2313_s2 = scalar_lea.vmem [#allocation9], %s1431_s30 }
  0x9b   : > { %p1438_p1 = scmp.ne.s32.totalorder %s1984_s9, 0 }
  0x9c   : > { %s2301_s22 = scalar_lea.vmem %s2547_s26, %s1433_s0  ;;  %v2008_v16 = vmov (!%p1438_p1), 0.0  }
  0x9d   : > { %523 = sbr.rel (%p1438_p1) target bundleno = 165 (0xa5), region = 101  ;;  %524 = vst [vmem:[#allocation2] sm:$0xff] (!%p1438_p1), %v2008_v16  ;;  %525 = vst [vmem:[#allocation2 + $0x8] sm:$0xff] (!%p1438_p1), %v2008_v16 }
  0x9e   : > { %s2306_s16 = scalar_lea.vmem %s2548_s19, %s1433_s0  ;;  %526 = vst [vmem:[#allocation2 + $0x10] sm:$0xff] (!%p1438_p1), %v2008_v16  ;;  %527 = vst [vmem:[#allocation2 + $0x18] sm:$0xff] (!%p1438_p1), %v2008_v16 }
  0x9f   : > { %s2311_s7 = scalar_lea.vmem %s2549_s15, %s1437_s3  ;;  %528 = vst [vmem:[#allocation2 + $0x20] sm:$0xff] (!%p1438_p1), %v2008_v16  ;;  %529 = vst [vmem:[#allocation2 + $0x28] sm:$0xff] (!%p1438_p1), %v2008_v16 }
  0xa0   : > { %530 = vst [vmem:[#allocation2 + $0x30] sm:$0xff] (!%p1438_p1), %v2008_v16  ;;  %531 = vst [vmem:[#allocation2 + $0x38] sm:$0xff] (!%p1438_p1), %v2008_v16 }
  0xa1   : > { %532 = vst [vmem:[#allocation2 + $0x40] sm:$0xff] (!%p1438_p1), %v2008_v16  ;;  %533 = vst [vmem:[#allocation2 + $0x48] sm:$0xff] (!%p1438_p1), %v2008_v16 }
  0xa2   : > { %534 = vst [vmem:[#allocation2 + $0x50] sm:$0xff] (!%p1438_p1), %v2008_v16  ;;  %535 = vst [vmem:[#allocation2 + $0x58] sm:$0xff] (!%p1438_p1), %v2008_v16 }
  0xa3   : > { %536 = vst [vmem:[#allocation2 + $0x60] sm:$0xff] (!%p1438_p1), %v2008_v16  ;;  %537 = vst [vmem:[#allocation2 + $0x68] sm:$0xff] (!%p1438_p1), %v2008_v16 }
  0xa4   : > { %538 = vst [vmem:[#allocation2 + $0x70] sm:$0xff] %v2008_v16  ;;  %539 = vst [vmem:[#allocation2 + $0x78] sm:$0xff] %v2008_v16 }
  0xa5 PF: > { %v558_v17 = vld [vmem:[%s2311_s7 + $0x10] sm:$0xff]  ;;  %v556_v18 = vld [vmem:[%s2311_s7] sm:$0xff]  ;;  %v2009_v19 = vmov 0   ;;  %v559_v20 = vld [vmem:[%s2311_s7 + $0x18] sm:$0xff]  ;;  %p1447_p4 = scmp.ne.s32.totalorder %s1984_s9, 1 }
  0xa6   : > { %1791 = vset.pattern.permute.xlu1 %v2009_v19  ;;  %1790 = vset.pattern.permute.xlu0 %v2009_v19  ;;  %v557_v21 = vld [vmem:[%s2311_s7 + $0x8] sm:$0xff]  ;;  %v560_v23 = vld [vmem:[%s2311_s7 + $0x20] sm:$0xff]  ;;  %v563_v24 = vld [vmem:[%s2311_s7 + $0x38] sm:$0xff] }
  0xa7   : > { %584 = vperm.xlu1 %1791, %v558_v17   ;;  %574 = vperm.xlu0 %1790, %v556_v18   ;;  %v561_v22 = vld [vmem:[%s2311_s7 + $0x28] sm:$0xff]  ;;  %v562_v25 = vld [vmem:[%s2311_s7 + $0x30] sm:$0xff]  ;;  %v564_v27 = vld [vmem:[%s2311_s7 + $0x40] sm:$0xff] }
  0xa8   : > { %v565_v26 = vld [vmem:[%s2311_s7 + $0x48] sm:$0xff]  ;;  %v567_v28 = vld [vmem:[%s2311_s7 + $0x58] sm:$0xff]  ;;  %v566_v29 = vld [vmem:[%s2311_s7 + $0x50] sm:$0xff] }
  0xa9   : > { %v569_v30 = vld [vmem:[%s2311_s7 + $0x68] sm:$0xff]  ;;  %v568_v31 = vld [vmem:[%s2311_s7 + $0x60] sm:$0xff]  ;;  %v571_v32 = vld [vmem:[%s2311_s7 + $0x78] sm:$0xff] }
  0xaa   : > { %v570_v33 = vld [vmem:[%s2311_s7 + $0x70] sm:$0xff]  ;;  %v1792_v34 = vld [vmem:[%s2285_s6] sm:$0xff]   ;;  %v543_v40 = vld [vmem:[%s2287_s21 + $0x18] sm:$0xff] }
  0xab   : > { %589 = vperm.xlu1 %1791, %v559_v20   ;;  %579 = vperm.xlu0 %1790, %v557_v21   ;;  %v1793_v35 = vld [vmem:[%s2285_s6 + $0x20] sm:$0xff]   ;;  %v542_v38 = vld [vmem:[%s2287_s21 + $0x10] sm:$0xff]  ;;  %v541_v41 = vld [vmem:[%s2287_s21 + $0x8] sm:$0xff] }
  0xac   : > { %1521 = vmatprep.mubr.bf16.mxu0 %v1792_v34  ;;  %1529 = vmatprep.mubr.bf16.mxu1 %v1793_v35  ;;  %v540_v39 = vld [vmem:[%s2287_s21] sm:$0xff]  ;;  %v545_v48 = vld [vmem:[%s2287_s21 + $0x28] sm:$0xff]  ;;  %v547_v56 = vld [vmem:[%s2287_s21 + $0x38] sm:$0xff] }
  0xad   : > { %v544_v49 = vld [vmem:[%s2287_s21 + $0x20] sm:$0xff]  ;;  %v546_v57 = vld [vmem:[%s2287_s21 + $0x30] sm:$0xff]  ;;  %v549_v63 = vld [vmem:[%s2287_s21 + $0x48] sm:$0xff] }
  0xae   : > { %v548_v0 = vld [vmem:[%s2287_s21 + $0x40] sm:$0xff]  ;;  %v551_v6 = vld [vmem:[%s2287_s21 + $0x58] sm:$0xff]  ;;  %v550_v7 = vld [vmem:[%s2287_s21 + $0x50] sm:$0xff] }
  0xaf   : > { %599 = vperm.xlu1 %1791, %v561_v22   ;;  %594 = vperm.xlu0 %1790, %v560_v23   ;;  %v553_v13 = vld [vmem:[%s2287_s21 + $0x68] sm:$0xff]  ;;  %v552_v14 = vld [vmem:[%s2287_s21 + $0x60] sm:$0xff]  ;;  %v555_v20 = vld [vmem:[%s2287_s21 + $0x78] sm:$0xff] }
  0xb0   : > { %v554_v21 = vld [vmem:[%s2287_s21 + $0x70] sm:$0xff]  ;;  %s2550_s21 = sld [smem:[#allocation25_spill]] (!%p1447_p4) }
  0xb1   : > { %v678_v34 = vld [vmem:[#allocation2 + $0x10] sm:$0xff] }
  0xb2   : > { %v686_v35 = vld [vmem:[#allocation2 + $0x50] sm:$0xff] }
  0xb3   : > { %609 = vperm.xlu1 %1791, %v563_v24   ;;  %604 = vperm.xlu0 %1790, %v562_v25  }
  0xb7   : > { %619 = vperm.xlu1 %1791, %v565_v26   ;;  %614 = vperm.xlu0 %1790, %v564_v27  }
  0xbb   : > { %629 = vperm.xlu1 %1791, %v567_v28   ;;  %624 = vperm.xlu0 %1790, %v566_v29   ;;  %v1794_v28 = vld [vmem:[%s2285_s6 + $0x8] sm:$0xff]  }
  0xbc   : > { %v1795_v29 = vld [vmem:[%s2285_s6 + $0x28] sm:$0xff]  }
  0xbf   : > { %639 = vperm.xlu1 %1791, %v569_v30   ;;  %634 = vperm.xlu0 %1790, %v568_v31   ;;  %v1796_v30 = vld [vmem:[%s2285_s6 + $0x10] sm:$0xff]  }
  0xc0   : > { %v1797_v31 = vld [vmem:[%s2285_s6 + $0x30] sm:$0xff]  }
  0xc3   : > { %649 = vperm.xlu1 %1791, %v571_v32   ;;  %644 = vperm.xlu0 %1790, %v570_v33   ;;  %v1798_v32 = vld [vmem:[%s2285_s6 + $0x18] sm:$0xff]  }
  0xc4   : > { %v1799_v33 = vld [vmem:[%s2285_s6 + $0x38] sm:$0xff]  }
 0x126   : > { %v585_v36 = vpop.permute.xlu1 %584  ;;  %v575_v37 = vpop.permute.xlu0 %574 }
 0x127   : > { %v654_v44 = vmul.f32 %v585_v36, %v542_v38  ;;  %v652_v45 = vmul.f32 %v575_v37, %v540_v39  ;;  %v676_v36 = vld [vmem:[#allocation2] sm:$0xff] }
 0x128   : > { %v684_v37 = vld [vmem:[#allocation2 + $0x40] sm:$0xff] }
 0x12a   : > { %v590_v42 = vpop.permute.xlu1 %589  ;;  %v580_v43 = vpop.permute.xlu0 %579 }
 0x12b   : > { %v655_v46 = vmul.f32 %v590_v42, %v543_v40  ;;  %v653_v47 = vmul.f32 %v580_v43, %v541_v41  ;;  %v679_v40 = vld [vmem:[#allocation2 + $0x18] sm:$0xff] }
 0x12c   : > { %v687_v41 = vld [vmem:[#allocation2 + $0x58] sm:$0xff] }
 0x12d   : > { %v668_v50 = vpack.c.bf16 %v653_v47, %v652_v45  ;;  %v669_v53 = vpack.c.bf16 %v655_v46, %v654_v44  ;;  %v677_v46 = vld [vmem:[#allocation2 + $0x8] sm:$0xff] }
 0x12e   : > { %v600_v51 = vpop.permute.xlu1 %599  ;;  %v595_v52 = vpop.permute.xlu0 %594  ;;  %v685_v47 = vld [vmem:[#allocation2 + $0x48] sm:$0xff] }
 0x12f   : > { %v657_v54 = vmul.f32 %v600_v51, %v545_v48  ;;  %v656_v55 = vmul.f32 %v595_v52, %v544_v49  ;;  %1505 = vmatprep.subr.bf16.mxu0 %v668_v50  ;;  %1625 = vmatprep.subr.bf16.mxu1 %v668_v50 }
 0x130   : > { %1506 = vmatpush3.bf16.msra.mxu0 %v668_v50  ;;  %1633 = vmatpush3.bf16.msra.mxu1 %v668_v50 }
 0x131   : > { %1507 = vmatprep.subr.bf16.mxu0 %v669_v53  ;;  %1626 = vmatprep.subr.bf16.mxu1 %v669_v53  ;;  %v670_v60 = vpack.c.bf16 %v657_v54, %v656_v55 }
 0x132   : > { %v610_v58 = vpop.permute.xlu1 %609  ;;  %v605_v59 = vpop.permute.xlu0 %604 }
 0x133   : > { %v659_v61 = vmul.f32 %v610_v58, %v547_v56  ;;  %v658_v62 = vmul.f32 %v605_v59, %v546_v57  ;;  %v682_v58 = vld [vmem:[#allocation2 + $0x30] sm:$0xff] }
 0x134   : > { %1508 = vmatpush3.bf16.msra.mxu0 %v669_v53  ;;  %1634 = vmatpush3.bf16.msra.mxu1 %v669_v53  ;;  %v690_v59 = vld [vmem:[#allocation2 + $0x70] sm:$0xff] }
 0x135   : > { %1509 = vmatprep.subr.bf16.mxu0 %v670_v60  ;;  %1627 = vmatprep.subr.bf16.mxu1 %v670_v60  ;;  %v671_v3 = vpack.c.bf16 %v659_v61, %v658_v62  ;;  %v688_v61 = vld [vmem:[#allocation2 + $0x60] sm:$0xff] }
 0x136   : > { %v620_v1 = vpop.permute.xlu1 %619  ;;  %v615_v2 = vpop.permute.xlu0 %614 }
 0x137   : > { %v661_v4 = vmul.f32 %v620_v1, %v549_v63  ;;  %v660_v5 = vmul.f32 %v615_v2, %v548_v0  ;;  %v683_v0 = vld [vmem:[#allocation2 + $0x38] sm:$0xff] }
 0x138   : > { %1510 = vmatpush3.bf16.msra.mxu0 %v670_v60  ;;  %1635 = vmatpush3.bf16.msra.mxu1 %v670_v60  ;;  %v680_v60 = vld [vmem:[#allocation2 + $0x20] sm:$0xff]  ;;  %v691_v1 = vld [vmem:[#allocation2 + $0x78] sm:$0xff] }
 0x139   : > { %1511 = vmatprep.subr.bf16.mxu0 %v671_v3  ;;  %1628 = vmatprep.subr.bf16.mxu1 %v671_v3  ;;  %v672_v10 = vpack.c.bf16 %v661_v4, %v660_v5 }
 0x13a   : > { %v630_v8 = vpop.permute.xlu1 %629  ;;  %v625_v9 = vpop.permute.xlu0 %624 }
 0x13b   : > { %v663_v11 = vmul.f32 %v630_v8, %v551_v6  ;;  %v662_v12 = vmul.f32 %v625_v9, %v550_v7  ;;  %v681_v6 = vld [vmem:[#allocation2 + $0x28] sm:$0xff] }
 0x13c   : > { %1512 = vmatpush3.bf16.msra.mxu0 %v671_v3  ;;  %1636 = vmatpush3.bf16.msra.mxu1 %v671_v3  ;;  %v689_v7 = vld [vmem:[#allocation2 + $0x68] sm:$0xff] }
 0x13d   : > { %1513 = vmatprep.subr.bf16.mxu0 %v672_v10  ;;  %1629 = vmatprep.subr.bf16.mxu1 %v672_v10  ;;  %v673_v17 = vpack.c.bf16 %v663_v11, %v662_v12 }
 0x13e   : > { %v640_v15 = vpop.permute.xlu1 %639  ;;  %v635_v16 = vpop.permute.xlu0 %634 }
 0x13f   : > { %v665_v18 = vmul.f32 %v640_v15, %v553_v13  ;;  %v664_v19 = vmul.f32 %v635_v16, %v552_v14 }
 0x140   : > { %1514 = vmatpush3.bf16.msra.mxu0 %v672_v10  ;;  %1637 = vmatpush3.bf16.msra.mxu1 %v672_v10 }
 0x141   : > { %1515 = vmatprep.subr.bf16.mxu0 %v673_v17  ;;  %1630 = vmatprep.subr.bf16.mxu1 %v673_v17  ;;  %v674_v24 = vpack.c.bf16 %v665_v18, %v664_v19  ;;  %v906_v18 = vld [vmem:[%s2301_s22 + $0x8] sm:$0xff] (!%p1447_p4)  ;;  %v905_v19 = vld [vmem:[%s2301_s22] sm:$0xff] (!%p1447_p4) }
 0x142   : > { %v650_v22 = vpop.permute.xlu1 %649  ;;  %v645_v23 = vpop.permute.xlu0 %644 }
 0x143   : > { %v667_v25 = vmul.f32 %v650_v22, %v555_v20  ;;  %v666_v26 = vmul.f32 %v645_v23, %v554_v21  ;;  %v2010_v20 = vmov (!%p1447_p4), 0   ;;  %v914_v21 = vld [vmem:[%s2301_s22 + $0x48] sm:$0xff] (!%p1447_p4)  ;;  %v913_v22 = vld [vmem:[%s2301_s22 + $0x40] sm:$0xff] (!%p1447_p4) }
 0x144   : > { %1516 = vmatpush3.bf16.msra.mxu0 %v673_v17  ;;  %1638 = vmatpush3.bf16.msra.mxu1 %v673_v17  ;;  %v1049_v23 = vld [vmem:[#allocation3] sm:$0xff] (!%p1447_p4) }
 0x145   : > { %1517 = vmatprep.subr.bf16.mxu0 %v674_v24  ;;  %1631 = vmatprep.subr.bf16.mxu1 %v674_v24  ;;  %v675_v27 = vpack.c.bf16 %v667_v25, %v666_v26  ;;  %v1051_v26 = vld [vmem:[#allocation3 + $0x10] sm:$0xff] (!%p1447_p4) }
 0x146   : > { %1801 = vset.pattern.permute.xlu1 (!%p1447_p4), %v2010_v20  ;;  %1800 = vset.pattern.permute.xlu0 (!%p1447_p4), %v2010_v20  ;;  %v891_v20 = vld [vmem:[%s2306_s16 + $0x10] sm:$0xff] (!%p1447_p4) }
 0x147   : > { %944 = vperm.xlu1 (!%p1447_p4), %1801, %v906_v18   ;;  %939 = vperm.xlu0 (!%p1447_p4), %1800, %v905_v19   ;;  %v899_v18 = vld [vmem:[%s2306_s16 + $0x50] sm:$0xff] (!%p1447_p4) }
 0x148   : > { %1518 = vmatpush3.bf16.msra.mxu0 %v674_v24  ;;  %1639 = vmatpush3.bf16.msra.mxu1 %v674_v24  ;;  %v1050_v24 = vld [vmem:[#allocation3 + $0x8] sm:$0xff] (!%p1447_p4) }
 0x149   : > { %1519 = vmatprep.subr.bf16.mxu0 %v675_v27  ;;  %1632 = vmatprep.subr.bf16.mxu1 %v675_v27  ;;  %v1593_v25 = vpack.c.bf16 (!%p1447_p4), %v1050_v24, %v1049_v23 }
 0x14b   : > { %984 = vperm.xlu1 (!%p1447_p4), %1801, %v914_v21   ;;  %979 = vperm.xlu0 (!%p1447_p4), %1800, %v913_v22  }
 0x14c   : > { %1520 = vmatpush3.bf16.msra.mxu0 %v675_v27  ;;  %1640 = vmatpush3.bf16.msra.mxu1 %v675_v27  ;;  %v1052_v27 = vld [vmem:[#allocation3 + $0x18] sm:$0xff] (!%p1447_p4) }
 0x14d   : > { %1594 = vmatprep.subr.bf16.mxu0 (!%p1447_p4), %v1593_v25  ;;  %1641 = vmatprep.subr.bf16.mxu1 (!%p1447_p4), %v1593_v25 }
 0x14f   : > { %1522 = vmatmul.mubr.bf16.vlgmr.msra.gmra.mrb[0].mxu0 %v1794_v28  ;;  %1530 = vmatmul.mubr.bf16.vlgmr.msra.gmra.mrb[0].mxu1 %v1795_v29  ;;  %v915_v28 = vld [vmem:[%s2301_s22 + $0x50] sm:$0xff] (!%p1447_p4) }
 0x150   : > { %1525 = vmatprep.mubr.bf16.mxu0 %v1796_v30  ;;  %1533 = vmatprep.mubr.bf16.mxu1 %v1797_v31  ;;  %v907_v29 = vld [vmem:[%s2301_s22 + $0x10] sm:$0xff] (!%p1447_p4)  ;;  %v1597_v30 = vpack.c.bf16 (!%p1447_p4), %v1052_v27, %v1051_v26  ;;  %v1053_v31 = vld [vmem:[#allocation3 + $0x20] sm:$0xff] (!%p1447_p4) }
 0x151   : > { %1596 = vmatpush3.bf16.msra.mxu0 (!%p1447_p4), %v1593_v25  ;;  %1649 = vmatpush3.bf16.msra.mxu1 (!%p1447_p4), %v1593_v25 }
 0x152   : > { %989 = vperm.xlu1 (!%p1447_p4), %1801, %v915_v28   ;;  %949 = vperm.xlu0 (!%p1447_p4), %1800, %v907_v29   ;;  %v900_v28 = vld [vmem:[%s2306_s16 + $0x58] sm:$0xff] (!%p1447_p4) }
 0x153   : > { %1598 = vmatprep.subr.bf16.mxu0 (!%p1447_p4), %v1597_v30  ;;  %1642 = vmatprep.subr.bf16.mxu1 (!%p1447_p4), %v1597_v30 }
 0x155   : > { %1600 = vmatpush3.bf16.msra.mxu0 (!%p1447_p4), %v1597_v30  ;;  %1650 = vmatpush3.bf16.msra.mxu1 (!%p1447_p4), %v1597_v30  ;;  %v892_v30 = vld [vmem:[%s2306_s16 + $0x18] sm:$0xff] (!%p1447_p4) }
 0x157   : > { %1526 = vmatmul.mubr.bf16.gmra.mrb[4].mxu0 %v1798_v32  ;;  %1534 = vmatmul.mubr.bf16.gmra.mrb[4].mxu1 %v1799_v33  ;;  %v1054_v32 = vld [vmem:[#allocation3 + $0x28] sm:$0xff] (!%p1447_p4)  ;;  %v916_v33 = vld [vmem:[%s2301_s22 + $0x58] sm:$0xff] (!%p1447_p4) }
 0x158   : > { %994 = vperm.xlu1 (!%p1447_p4), %1801, %v916_v33  }
 0x222   : > { %v1523_v38 = vpop.f32.mrb[0].mxu0  ;;  %v1531_v39 = vpop.f32.mrb[0].mxu1 }
 0x223   : > { %v855_v42 = vadd.f32 %v1523_v38, %v678_v34  ;;  %v863_v43 = vadd.f32 %v1531_v39, %v686_v35  ;;  %v790_v44 = vpop.f32.mrb[1].mxu0  ;;  %v822_v45 = vpop.f32.mrb[1].mxu1  ;;  %v908_v34 = vld [vmem:[%s2301_s22 + $0x18] sm:$0xff] (!%p1447_p4)  ;;  %v1601_v35 = vpack.c.bf16 (!%p1447_p4), %v1054_v32, %v1053_v31  ;;  %v917_v38 = vld [vmem:[%s2301_s22 + $0x60] sm:$0xff] (!%p1447_p4) }
 0x224   : > { %v853_v48 = vadd.f32 %v790_v44, %v676_v36  ;;  %v861_v49 = vadd.f32 %v822_v45, %v684_v37  ;;  %v1524_v50 = vpop.f32.mrb[2].mxu0  ;;  %v1532_v51 = vpop.f32.mrb[2].mxu1  ;;  %v1055_v36 = vld [vmem:[#allocation3 + $0x30] sm:$0xff] (!%p1447_p4)  ;;  %v1056_v37 = vld [vmem:[#allocation3 + $0x38] sm:$0xff] (!%p1447_p4)  ;;  %954 = vperm.xlu0 (!%p1447_p4), %1800, %v908_v34   ;;  %v909_v39 = vld [vmem:[%s2301_s22 + $0x20] sm:$0xff] (!%p1447_p4)  ;;  %999 = vperm.xlu1 (!%p1447_p4), %1801, %v917_v38  }
 0x225   : > { %871 = vst [vmem:[#allocation2 + $0x10] sm:$0xff] %v855_v42  ;;  %879 = vst [vmem:[#allocation2 + $0x50] sm:$0xff] %v863_v43  ;;  %v856_v52 = vadd.f32 %v1524_v50, %v679_v40  ;;  %v864_v53 = vadd.f32 %v1532_v51, %v687_v41  ;;  %v793_v54 = vpop.f32.mrb[3].mxu0  ;;  %v825_v55 = vpop.f32.mrb[3].mxu1  ;;  %1602 = vmatprep.subr.bf16.mxu0 (!%p1447_p4), %v1601_v35  ;;  %1643 = vmatprep.subr.bf16.mxu1 (!%p1447_p4), %v1601_v35  ;;  %v1057_v41 = vld [vmem:[#allocation3 + $0x40] sm:$0xff] (!%p1447_p4)  ;;  %v1058_v42 = vld [vmem:[#allocation3 + $0x48] sm:$0xff] (!%p1447_p4) }
 0x226   : > { %869 = vst [vmem:[#allocation2] sm:$0xff] %v853_v48  ;;  %877 = vst [vmem:[#allocation2 + $0x40] sm:$0xff] %v861_v49  ;;  %v854_v56 = vadd.f32 %v793_v54, %v677_v46  ;;  %v862_v57 = vadd.f32 %v825_v55, %v685_v47  ;;  %v1605_v40 = vpack.c.bf16 (!%p1447_p4), %v1056_v37, %v1055_v36  ;;  %1604 = vmatpush3.bf16.msra.mxu0 (!%p1447_p4), %v1601_v35  ;;  %v918_v43 = vld [vmem:[%s2301_s22 + $0x68] sm:$0xff] (!%p1447_p4)  ;;  %v1059_v46 = vld [vmem:[#allocation3 + $0x50] sm:$0xff] (!%p1447_p4) }
 0x227   : > { %872 = vst [vmem:[#allocation2 + $0x18] sm:$0xff] %v856_v52  ;;  %880 = vst [vmem:[#allocation2 + $0x58] sm:$0xff] %v864_v53  ;;  %1651 = vmatpush3.bf16.msra.mxu1 (!%p1447_p4), %v1601_v35  ;;  %v910_v44 = vld [vmem:[%s2301_s22 + $0x28] sm:$0xff] (!%p1447_p4)  ;;  %v1609_v45 = vpack.c.bf16 (!%p1447_p4), %v1058_v42, %v1057_v41  ;;  %v1060_v47 = vld [vmem:[#allocation3 + $0x58] sm:$0xff] (!%p1447_p4) }
 0x228   : > { %870 = vst [vmem:[#allocation2 + $0x8] sm:$0xff] %v854_v56  ;;  %878 = vst [vmem:[#allocation2 + $0x48] sm:$0xff] %v862_v57  ;;  %959 = vperm.xlu0 (!%p1447_p4), %1800, %v909_v39   ;;  %1606 = vmatprep.subr.bf16.mxu0 (!%p1447_p4), %v1605_v40  ;;  %v919_v48 = vld [vmem:[%s2301_s22 + $0x70] sm:$0xff] (!%p1447_p4)  ;;  %v1613_v50 = vpack.c.bf16 (!%p1447_p4), %v1060_v47, %v1059_v46  ;;  %v1061_v51 = vld [vmem:[#allocation3 + $0x60] sm:$0xff] (!%p1447_p4) }
 0x229   : > { %1644 = vmatprep.subr.bf16.mxu1 (!%p1447_p4), %v1605_v40  ;;  %1004 = vperm.xlu1 (!%p1447_p4), %1801, %v918_v43   ;;  %v911_v49 = vld [vmem:[%s2301_s22 + $0x30] sm:$0xff] (!%p1447_p4)  ;;  %v1062_v52 = vld [vmem:[#allocation3 + $0x68] sm:$0xff] (!%p1447_p4)  ;;  %v920_v53 = vld [vmem:[%s2301_s22 + $0x78] sm:$0xff] (!%p1447_p4) }
 0x22a   : > { %v1527_v62 = vpop.f32.mrb[4].mxu0  ;;  %v1535_v63 = vpop.f32.mrb[4].mxu1  ;;  %888 = sbr.rel (%p1447_p4) target bundleno = 914 (0x392), region = 105  ;;  %1608 = vmatpush3.bf16.msra.mxu0 (!%p1447_p4), %v1605_v40  ;;  %v912_v54 = vld [vmem:[%s2301_s22 + $0x38] sm:$0xff] (!%p1447_p4)  ;;  %v1617_v55 = vpack.c.bf16 (!%p1447_p4), %v1062_v52, %v1061_v51  ;;  %v1063_v56 = vld [vmem:[#allocation3 + $0x70] sm:$0xff] (!%p1447_p4)  ;;  %v901_v38 = vld [vmem:[%s2306_s16 + $0x60] sm:$0xff] (!%p1447_p4) }
 0x22b   : > { %v859_v2 = vadd.f32 %v1527_v62, %v682_v58  ;;  %v867_v3 = vadd.f32 %v1535_v63, %v690_v59  ;;  %v806_v4 = vpop.f32.mrb[5].mxu0  ;;  %v838_v5 = vpop.f32.mrb[5].mxu1  ;;  %1652 = vmatpush3.bf16.msra.mxu1 (!%p1447_p4), %v1605_v40  ;;  %1610 = vmatprep.subr.bf16.mxu0 (!%p1447_p4), %v1609_v45  ;;  %v1064_v57 = vld [vmem:[#allocation3 + $0x78] sm:$0xff] (!%p1447_p4)  ;;  %v890_v62 = vld [vmem:[%s2306_s16 + $0x8] sm:$0xff] (!%p1447_p4)  ;;  %v893_v40 = vld [vmem:[%s2306_s16 + $0x20] sm:$0xff] (!%p1447_p4) }
 0x22c   : > { %v857_v8 = vadd.f32 %v806_v4, %v680_v60  ;;  %v865_v9 = vadd.f32 %v838_v5, %v688_v61  ;;  %v1528_v10 = vpop.f32.mrb[6].mxu0  ;;  %v1536_v11 = vpop.f32.mrb[6].mxu1  ;;  %964 = vperm.xlu0 (!%p1447_p4), %1800, %v910_v44   ;;  %1645 = vmatprep.subr.bf16.mxu1 (!%p1447_p4), %v1609_v45  ;;  %v1621_v58 = vpack.c.bf16 (!%p1447_p4), %v1064_v57, %v1063_v56 }
 0x22d   : > { %875 = vst [vmem:[#allocation2 + $0x30] sm:$0xff] %v859_v2  ;;  %883 = vst [vmem:[#allocation2 + $0x70] sm:$0xff] %v867_v3  ;;  %v860_v12 = vadd.f32 %v1528_v10, %v683_v0  ;;  %v868_v13 = vadd.f32 %v1536_v11, %v691_v1  ;;  %v809_v14 = vpop.f32.mrb[7].mxu0  ;;  %v841_v15 = vpop.f32.mrb[7].mxu1  ;;  %1009 = vperm.xlu1 (!%p1447_p4), %1801, %v919_v48   ;;  %v921_v60 = vld [vmem:[#allocation2] sm:$0xff] (!%p1447_p4)  ;;  %v902_v48 = vld [vmem:[%s2306_s16 + $0x68] sm:$0xff] (!%p1447_p4) }
 0x22e   : > { %873 = vst [vmem:[#allocation2 + $0x20] sm:$0xff] %v857_v8  ;;  %881 = vst [vmem:[#allocation2 + $0x60] sm:$0xff] %v865_v9  ;;  %v858_v16 = vadd.f32 %v809_v14, %v681_v6  ;;  %v866_v17 = vadd.f32 %v841_v15, %v689_v7  ;;  %1612 = vmatpush3.bf16.msra.mxu0 (!%p1447_p4), %v1609_v45  ;;  %v945_v61 = vpop.permute.xlu1 (!%p1447_p4), %944  ;;  %v940_v63 = vpop.permute.xlu0 (!%p1447_p4), %939  ;;  %v889_v0 = vld [vmem:[%s2306_s16] sm:$0xff] (!%p1447_p4)  ;;  %v898_v8 = vld [vmem:[%s2306_s16 + $0x48] sm:$0xff] (!%p1447_p4) }
 0x22f   : > { %876 = vst [vmem:[#allocation2 + $0x38] sm:$0xff] %v860_v12  ;;  %884 = vst [vmem:[#allocation2 + $0x78] sm:$0xff] %v868_v13  ;;  %1653 = vmatpush3.bf16.msra.mxu1 (!%p1447_p4), %v1609_v45  ;;  %1614 = vmatprep.subr.bf16.mxu0 (!%p1447_p4), %v1613_v50  ;;  %v922_v59 = vld [vmem:[#allocation2 + $0x8] sm:$0xff] (!%p1447_p4)  ;;  %v1017_v2 = vmul.f32 (!%p1447_p4), %v940_v63, %v921_v60  ;;  %v929_v4 = vld [vmem:[#allocation2 + $0x40] sm:$0xff] (!%p1447_p4) }
 0x230   : > { %874 = vst [vmem:[#allocation2 + $0x28] sm:$0xff] %v858_v16  ;;  %882 = vst [vmem:[#allocation2 + $0x68] sm:$0xff] %v866_v17  ;;  %969 = vperm.xlu0 (!%p1447_p4), %1800, %v911_v49   ;;  %1646 = vmatprep.subr.bf16.mxu1 (!%p1447_p4), %v1613_v50  ;;  %v1018_v1 = vmul.f32 (!%p1447_p4), %v945_v61, %v922_v59  ;;  %v930_v3 = vld [vmem:[#allocation2 + $0x48] sm:$0xff] (!%p1447_p4)  ;;  %v897_v10 = vld [vmem:[%s2306_s16 + $0x40] sm:$0xff] (!%p1447_p4) }
 0x231   : > { %1014 = vperm.xlu1 %1801, %v920_v53   ;;  %v1033_v6 = vsub.f32 %v889_v0, %v1017_v2  ;;  %v931_v13 = vld [vmem:[#allocation2 + $0x50] sm:$0xff]  ;;  %v932_v23 = vld [vmem:[#allocation2 + $0x58] sm:$0xff] }
 0x232   : > { %1616 = vmatpush3.bf16.msra.mxu0 %v1613_v50  ;;  %v1034_v5 = vsub.f32 %v890_v62, %v1018_v1  ;;  %v985_v7 = vpop.permute.xlu1 %984  ;;  %v980_v9 = vpop.permute.xlu0 %979  ;;  %v923_v14 = vld [vmem:[#allocation2 + $0x10] sm:$0xff]  ;;  %v924_v24 = vld [vmem:[#allocation2 + $0x18] sm:$0xff] }
 0x233   : > { %1654 = vmatpush3.bf16.msra.mxu1 %v1613_v50  ;;  %1618 = vmatprep.subr.bf16.mxu0 %v1617_v55  ;;  %v1026_v11 = vmul.f32 %v985_v7, %v930_v3  ;;  %v1025_v12 = vmul.f32 %v980_v9, %v929_v4  ;;  %v894_v50 = vld [vmem:[%s2306_s16 + $0x28] sm:$0xff]  ;;  %v895_v60 = vld [vmem:[%s2306_s16 + $0x30] sm:$0xff]  ;;  %v904_v4 = vld [vmem:[%s2306_s16 + $0x78] sm:$0xff] }
 0x234   : > { %974 = vperm.xlu0 %1800, %v912_v54   ;;  %1647 = vmatprep.subr.bf16.mxu1 %v1617_v55  ;;  %v935_v53 = vld [vmem:[#allocation2 + $0x70] sm:$0xff] }
 0x235   : > { %1569 = vmatprep.mubr.f32.mxu0 %v1033_v6  ;;  %v1042_v15 = vsub.f32 %v898_v8, %v1026_v11  ;;  %v1041_v16 = vsub.f32 %v897_v10, %v1025_v12  ;;  %v933_v33 = vld [vmem:[#allocation2 + $0x60] sm:$0xff]  ;;  %v927_v54 = vld [vmem:[#allocation2 + $0x30] sm:$0xff]  ;;  %v896_v6 = vld [vmem:[%s2306_s16 + $0x38] sm:$0xff] }
 0x236   : > { %1620 = vmatpush3.bf16.msra.mxu0 %v1617_v55  ;;  %v990_v17 = vpop.permute.xlu1 %989  ;;  %v950_v19 = vpop.permute.xlu0 %949  ;;  %v925_v34 = vld [vmem:[#allocation2 + $0x20] sm:$0xff]  ;;  %v936_v63 = vld [vmem:[#allocation2 + $0x78] sm:$0xff] }
 0x237   : > { %1655 = vmatpush3.bf16.msra.mxu1 %v1617_v55  ;;  %1622 = vmatprep.subr.bf16.mxu0 %v1621_v58  ;;  %v1027_v21 = vmul.f32 %v990_v17, %v931_v13  ;;  %v1019_v22 = vmul.f32 %v950_v19, %v923_v14  ;;  %v934_v43 = vld [vmem:[#allocation2 + $0x68] sm:$0xff]  ;;  %v928_v0 = vld [vmem:[#allocation2 + $0x38] sm:$0xff]  ;;  %v1448_v11 = vld [vmem:[%s2550_s21] ss:$0 sm:$0xff] }
 0x238   : > { %1648 = vmatprep.subr.bf16.mxu1 %v1621_v58  ;;  %1581 = vmatprep.mubr.f32.mxu1 %v1041_v16  ;;  %v926_v44 = vld [vmem:[#allocation2 + $0x28] sm:$0xff] }
 0x239   : > { %v1043_v25 = vsub.f32 %v899_v18, %v1027_v21  ;;  %v1035_v26 = vsub.f32 %v891_v20, %v1019_v22 }
 0x23a   : > { %1624 = vmatpush3.bf16.msra.mxu0 %v1621_v58  ;;  %v995_v27 = vpop.permute.xlu1 %994 }
 0x23b   : > { %1656 = vmatpush3.bf16.msra.mxu1 %v1621_v58  ;;  %v1028_v31 = vmul.f32 %v995_v27, %v932_v23  ;;  %v903_v58 = vld [vmem:[%s2306_s16 + $0x70] sm:$0xff] }
 0x23d   : > { %1570 = vmatmul.mubr.f32.vlgmr.msra.gmra.mrb[0].mxu0 %v1034_v5  ;;  %v1044_v35 = vsub.f32 %v900_v28, %v1028_v31 }
 0x23e   : > { %1582 = vmatmul.mubr.f32.vlgmr.msra.gmra.mrb[0].mxu1 %v1042_v15  ;;  %1572 = vmatprep.mubr.f32.mxu0 %v1035_v26 }
 0x23f   : > { %1584 = vmatprep.mubr.f32.mxu1 %v1043_v25 }
 0x242   : > { %1585 = vmatmul.mubr.f32.gmra.mrb[2].mxu1 %v1044_v35 }
 0x2a3   : > { %v955_v29 = vpop.permute.xlu0 %954  ;;  %v1000_v37 = vpop.permute.xlu1 %999 }
 0x2a4   : > { %v1020_v32 = vmul.f32 %v955_v29, %v924_v24  ;;  %v1029_v41 = vmul.f32 %v1000_v37, %v933_v33 }
 0x2a6   : > { %v1036_v36 = vsub.f32 %v892_v30, %v1020_v32  ;;  %v1045_v45 = vsub.f32 %v901_v38, %v1029_v41 }
 0x2a7   : > { %v960_v39 = vpop.permute.xlu0 %959 }
 0x2a8   : > { %v1021_v42 = vmul.f32 %v960_v39, %v925_v34  ;;  %1573 = vmatmul.mubr.f32.gmra.mrb[2].mxu0 %v1036_v36  ;;  %v1005_v47 = vpop.permute.xlu1 %1004  ;;  %1587 = vmatprep.mubr.f32.mxu1 %v1045_v45 }
 0x2a9   : > { %v1030_v51 = vmul.f32 %v1005_v47, %v934_v43 }
 0x2aa   : > { %v1037_v46 = vsub.f32 %v893_v40, %v1021_v42 }
 0x2ab   : > { %v965_v49 = vpop.permute.xlu0 %964  ;;  %v1046_v55 = vsub.f32 %v902_v48, %v1030_v51 }
 0x2ac   : > { %v1022_v52 = vmul.f32 %v965_v49, %v926_v44  ;;  %1575 = vmatprep.mubr.f32.mxu0 %v1037_v46  ;;  %v1010_v57 = vpop.permute.xlu1 %1009 }
 0x2ad   : > { %v1031_v61 = vmul.f32 %v1010_v57, %v935_v53  ;;  %1588 = vmatmul.mubr.f32.gmra.mrb[4].mxu1 %v1046_v55 }
 0x2ae   : > { %v1038_v56 = vsub.f32 %v894_v50, %v1022_v52 }
 0x2af   : > { %v970_v59 = vpop.permute.xlu0 %969  ;;  %v1047_v1 = vsub.f32 %v903_v58, %v1031_v61 }
 0x2b0   : > { %v1023_v62 = vmul.f32 %v970_v59, %v927_v54  ;;  %1576 = vmatmul.mubr.f32.gmra.mrb[4].mxu0 %v1038_v56  ;;  %v1015_v3 = vpop.permute.xlu1 %1014 }
 0x2b1   : > { %v1032_v7 = vmul.f32 %v1015_v3, %v936_v63  ;;  %1590 = vmatprep.mubr.f32.mxu1 %v1047_v1 }
 0x2b2   : > { %v1039_v2 = vsub.f32 %v895_v60, %v1023_v62 }
 0x2b3   : > { %v975_v5 = vpop.permute.xlu0 %974  ;;  %v1048_v9 = vsub.f32 %v904_v4, %v1032_v7 }
 0x2b4   : > { %v1024_v8 = vmul.f32 %v975_v5, %v928_v0  ;;  %1578 = vmatprep.mubr.f32.mxu0 %v1039_v2 }
 0x2b5   : > { %1591 = vmatmul.mubr.f32.gmra.mrb[6].mxu1 %v1048_v9 }
 0x2b6   : > { %v1040_v10 = vsub.f32 %v896_v6, %v1024_v8 }
 0x2b8   : > { %1579 = vmatmul.mubr.f32.gmra.mrb[6].mxu0 %v1040_v10 }
 0x310   : > { %v1571_v12 = vpop.f32.mrb[0].mxu0 }
 0x311   : > { %v1144_v13 = vadd.f32 %v1571_v12, %v1448_v11  ;;  %v1138_v14 = vpop.f32.mrb[1].mxu0  ;;  %v1583_v18 = vpop.f32.mrb[0].mxu1 }
 0x312   : > { %v1139_v15 = vadd.f32 %v1448_v11, %v1138_v14  ;;  %v1184_v19 = vadd.f32 %v1583_v18, %v1448_v11  ;;  %v1178_v20 = vpop.f32.mrb[1].mxu1 }
 0x313   : > { %v1218_v16 = vmax.f32 %v1144_v13, 0.0  ;;  %v1179_v21 = vadd.f32 %v1448_v11, %v1178_v20 }
 0x314   : > { %v1217_v17 = vmax.f32 %v1139_v15, 0.0  ;;  %v1226_v22 = vmax.f32 %v1184_v19, 0.0 }
 0x315   : > { %1234 = vst [vmem:[%s2313_s2 + $0x8] sm:$0xff] %v1218_v16  ;;  %v1225_v23 = vmax.f32 %v1179_v21, 0.0  ;;  %v1586_v25 = vpop.f32.mrb[2].mxu1 }
 0x316   : > { %1233 = vst [vmem:[%s2313_s2] sm:$0xff] %v1217_v17  ;;  %1242 = vst [vmem:[%s2313_s2 + $0x48] sm:$0xff] %v1226_v22  ;;  %v1194_v27 = vadd.f32 %v1586_v25, %v1448_v11  ;;  %v1188_v29 = vpop.f32.mrb[3].mxu1 }
 0x317   : > { %1241 = vst [vmem:[%s2313_s2 + $0x40] sm:$0xff] %v1225_v23  ;;  %v1189_v31 = vadd.f32 %v1448_v11, %v1188_v29 }
 0x318   : > { %v1228_v33 = vmax.f32 %v1194_v27, 0.0 }
 0x319   : > { %v1227_v35 = vmax.f32 %v1189_v31, 0.0 }
 0x31a   : > { %1244 = vst [vmem:[%s2313_s2 + $0x58] sm:$0xff] %v1228_v33 }
 0x31b   : > { %1243 = vst [vmem:[%s2313_s2 + $0x50] sm:$0xff] %v1227_v35 }
 0x37b   : > { %v1574_v24 = vpop.f32.mrb[2].mxu0 }
 0x37c   : > { %v1154_v26 = vadd.f32 %v1574_v24, %v1448_v11  ;;  %v1148_v28 = vpop.f32.mrb[3].mxu0 }
 0x37d   : > { %v1149_v30 = vadd.f32 %v1448_v11, %v1148_v28 }
 0x37e   : > { %v1220_v32 = vmax.f32 %v1154_v26, 0.0 }
 0x37f   : > { %v1219_v34 = vmax.f32 %v1149_v30, 0.0 }
 0x380   : > { %1236 = vst [vmem:[%s2313_s2 + $0x18] sm:$0xff] %v1220_v32  ;;  %v1589_v37 = vpop.f32.mrb[4].mxu1 }
 0x381   : > { %1235 = vst [vmem:[%s2313_s2 + $0x10] sm:$0xff] %v1219_v34  ;;  %v1204_v39 = vadd.f32 %v1589_v37, %v1448_v11  ;;  %v1198_v41 = vpop.f32.mrb[5].mxu1 }
 0x382   : > { %v1199_v43 = vadd.f32 %v1448_v11, %v1198_v41 }
 0x383   : > { %v1577_v36 = vpop.f32.mrb[4].mxu0  ;;  %v1230_v45 = vmax.f32 %v1204_v39, 0.0 }
 0x384   : > { %v1164_v38 = vadd.f32 %v1577_v36, %v1448_v11  ;;  %v1158_v40 = vpop.f32.mrb[5].mxu0  ;;  %v1229_v47 = vmax.f32 %v1199_v43, 0.0 }
 0x385   : > { %v1159_v42 = vadd.f32 %v1448_v11, %v1158_v40  ;;  %1246 = vst [vmem:[%s2313_s2 + $0x68] sm:$0xff] %v1230_v45 }
 0x386   : > { %v1222_v44 = vmax.f32 %v1164_v38, 0.0  ;;  %1245 = vst [vmem:[%s2313_s2 + $0x60] sm:$0xff] %v1229_v47 }
 0x387   : > { %v1221_v46 = vmax.f32 %v1159_v42, 0.0 }
 0x388   : > { %1238 = vst [vmem:[%s2313_s2 + $0x28] sm:$0xff] %v1222_v44  ;;  %v1592_v49 = vpop.f32.mrb[6].mxu1 }
 0x389   : > { %1237 = vst [vmem:[%s2313_s2 + $0x20] sm:$0xff] %v1221_v46  ;;  %v1214_v51 = vadd.f32 %v1592_v49, %v1448_v11  ;;  %v1208_v53 = vpop.f32.mrb[7].mxu1 }
 0x38a   : > { %v1209_v55 = vadd.f32 %v1448_v11, %v1208_v53 }
 0x38b   : > { %v1580_v48 = vpop.f32.mrb[6].mxu0  ;;  %v1232_v57 = vmax.f32 %v1214_v51, 0.0 }
 0x38c   : > { %v1174_v50 = vadd.f32 %v1580_v48, %v1448_v11  ;;  %v1168_v52 = vpop.f32.mrb[7].mxu0  ;;  %v1231_v59 = vmax.f32 %v1209_v55, 0.0 }
 0x38d   : > { %v1169_v54 = vadd.f32 %v1448_v11, %v1168_v52  ;;  %1248 = vst [vmem:[%s2313_s2 + $0x78] sm:$0xff] %v1232_v57 }
 0x38e   : > { %v1224_v56 = vmax.f32 %v1174_v50, 0.0  ;;  %1247 = vst [vmem:[%s2313_s2 + $0x70] sm:$0xff] %v1231_v59 }
 0x38f   : > { %v1223_v58 = vmax.f32 %v1169_v54, 0.0 }
 0x390   : > { %1240 = vst [vmem:[%s2313_s2 + $0x38] sm:$0xff] %v1224_v56 }
 0x391   : > { %1239 = vst [vmem:[%s2313_s2 + $0x30] sm:$0xff] %v1223_v58 }
 0x392 PF: > { %s2551_s7 = sld [smem:[#allocation20_spill]]  ;;  %s1456_s23 = sshll.u32 %s1988_s10, 11 }
 0x393   : > { %s2552_s0 = sld [smem:[#allocation27_spill]]  ;;  %s1263_s27 = sshll.u32 %s2313_s2, 4  ;;  %s2415_s27 = int_to_ptr.vmem [resolvable:$true] %s1263_s27 }
 0x394   : > { %s2553_s26 = sand.u32 1, %s1956_s25   ;;  %s1858_s17 = scalar_lea.vmem %s2415_s27, 2048 }
 0x395   : > { %s2419_s22 = scalar_lea.sflag [#allocation5], %s2553_s26  ;;  %p1859_p6 = scmp.ne.s32.totalorder %s2415_s27, %s1858_s17 }
 0x396   : > { %s2011_s10 = smov [#allocation9]  }
 0x397   : > { %s1862_s18 = sshll.u32 %s2011_s10, 4  ;;  %s1863_s18 = int_to_ptr.vmem [resolvable:$false] %s1862_s18 }
 0x398   : > { %p2554_p11 = scmp.ne.s32.totalorder %s2551_s7, 0  ;;  %s1864_s19 = scalar_lea.vmem %s1863_s18, 4096 }
 0x399   : > { %s2412_s1 = scalar_lea.hbm %s2552_s0, %s1456_s23  ;;  %p1865_p3 = scmp.lt.s32.totalorder %s2415_s27, %s1863_s18 }
 0x39a   : > { %p1860_p0 = pnand %p1859_p6, %p2554_p11  ;;  %p1866_p10 = scmp.lt.s32.totalorder %s1864_s19, %s1858_s17 }
 0x39c   : > { %p1861_p2 = pneg %p1860_p0  ;;  %p1867_p5 = por %p1866_p10, %p1865_p3 }
 0x39e   : > { %p1868_p12 = pnand %p1867_p5, %p1861_p2 }
 0x3a0   : > { %1871 = shalt.err (!%p1868_p12)
}
 0x3a1   : > { %s1872_s2 = scalar_lea.hbm %s2412_s1, 2048  ;;  %s1876_s14 = scalar_lea.hbm %s2552_s0, 4096 }
 0x3a2   : > { %p1873_p9 = scmp.ne.s32.totalorder %s2412_s1, %s1872_s2  ;;  %p1877_p13 = scmp.lt.u32.totalorder %s2412_s1, %s2552_s0 }
 0x3a3   : > { %p1878_p1 = scmp.lt.u32.totalorder %s1876_s14, %s1872_s2  ;;  %p1880_p6 = scmp.lt.u32.totalorder %s1872_s2, %s2412_s1 }
 0x3a4   : > { %p1874_p7 = pnand %p1873_p9, %p2554_p11 }
 0x3a5   : > { %p1879_p4 = por %p1878_p1, %p1877_p13 }
 0x3a6   : > { %p1875_p8 = pneg %p1874_p7 }
 0x3a7   : > { %p1881_p0 = por %p1880_p6, %p1879_p4 }
 0x3a9   : > { %p1882_p2 = pnand %p1881_p0, %p1875_p8 }
 0x3ab   : > { %1885 = shalt.err (!%p1882_p2)
}
 0x3ac   : > { %s2012_s9 = smov 128   ;;  %s2013_s6 = smov 8  }
 0x3ad   : > { %1663 = dma.vmem_to_hbm [thread:$0]  (%p2554_p11), %s2415_s27, 2048, %s2412_s1, %s2419_s22, %s2012_s9, %s2012_s9, %s2013_s6  }
 0x3ae PF: > { %s2555_s21 = sld [smem:[#allocation13_spill]]  ;;  %s2556_s23 = sld [smem:[#allocation21_spill]] }
 0x3af   : > { %p1675_p3 = scmp.ge.s32.totalorder %s2000_s13, 2 }
 0x3b4   : > { %s1278_s30 = sand.u32 1, %s2555_s21   ;;  %p2557_p10 = scmp.ne.s32.totalorder %s2556_s23, 0 }
 0x3b5   : > { %s1279_s24 = scalar_lea.sflag [#allocation5], %s1278_s30 }
 0x3b6   : > { %p1670_p5 = pnand %p1675_p3, %p2557_p10 }
 0x3b8   : > { %1947 = dma.done.wait (!%p1670_p5), %s1279_s24, 2048  }
 0x3b9   : > { %1949 = vsyncadd (!%p1670_p5), %s1279_s24, 4294965248  ;;  %s24_s13 = sadd.s32 1, %s2000_s13   ;;  %s2559_s7 = sld [smem:[#allocation14_spill]] }
 0x3ba   : > { %p2448_p12 = scmp.ge.s32.totalorder %s24_s13, 6   ;;  %s2560_s1 = sld [smem:[#allocation19_spill]] }
 0x3bb   : > { %s2561_s22 = sld [smem:[#allocation17_spill]]  ;;  %s2562_s17 = sld [smem:[#allocation18_spill]] }
 0x3bc   : > { %s2563_s18 = sld [smem:[#allocation15_spill]]  ;;  %s2564_s19 = sld [smem:[#allocation16_spill]] }
 0x3bd   : > { %s2566_s24 = smov %s1956_s25  ;;  %s2569_s27 = smov %s1968_s28 }
 0x3be   : > { %s2570_s28 = smov %s1972_s29  ;;  %s2572_s30 = smov %s1980_s8 }
 0x3bf   : > { %s2567_s25 = smov %s2559_s7  ;;  %s2574_s9 = smov %s1992_s11 }
 0x3c0   : > { %s2568_s26 = smov %s2560_s1  ;;  %s2575_s10 = smov %s1996_s12 }
 0x3c1   : > { %s2571_s29 = smov %s2561_s22  ;;  %s2573_s8 = smov %s2562_s17 }
 0x3c2   : > { %s2576_s11 = smov %s2563_s18  ;;  %s2577_s12 = smov %s2564_s19 }
 0x3c3   :  { %23 = sbr.rel (!%p2448_p12) target bundleno = 18 (0x12), region = 164 }
 0x3ca   :  { %1284 = vsyncpa [#allocation4], 1 }
 0x3cb   :  { %1286 = vsyncpa [#allocation4 + $0x1], 1 }
 0x3cc   :  { %1287 = vsyncpa [#allocation8], 1 }
 0x3cd   :  { %1289 = vsyncpa [#allocation8 + $0x1], 1 }
 0x3ce   :  { %1290 = vsyncpa [#allocation5], 1 }
 0x3cf   :  { %1292 = vsyncpa [#allocation5 + $0x1], 1 }

</bundles_post_ra>
